<compile_context>
chip_gen: v7x
topology: tpu7x:2x2x1
jax: 0.10.0
libtpu: 0.0.40
codegen_flags: <defaults>
</compile_context>

<pallas_src>
import jax
import jax.numpy as jnp
from jax.experimental import pallas as pl
from jax.experimental.pallas import tpu as pltpu

LANE = 128      # TPU lane width (last dim of a vreg)
SUBLANE = 8     # TPU sublane width (second-to-last dim of an f32 vreg)


def _cdiv(a, b):
    return -(-a // b)


def _round_up(x, m):
    return _cdiv(x, m) * m


def _pick_chunk(tile_rows):
    """Largest multiple of SUBLANE <= 128 that divides tile_rows (>= 8)."""
    best = SUBLANE
    c = SUBLANE
    while c <= min(128, tile_rows):
        if tile_rows % c == 0:
            best = c
        c += SUBLANE
    return best


def _default_partitioning():
    """(num_partials, core_parallel): split across TCs only on 2-core chips."""
    try:
        kind = jax.devices()[0].device_kind.lower()
    except Exception:
        return 1, False
    if "7" in kind:          # e.g. "tpu7x" / "tpu v7x" -> 2 TensorCores per chip
        return 2, True
    return 1, False          # v5e / v6e: single TensorCore


def _latent_slab(a, lat_rows):
    """Tiny latent stats -> f32 (lat_rows, 128) lane-major slab (zero padded)."""
    flat = jnp.ravel(a).astype(jnp.float32)
    pad = lat_rows * LANE - flat.shape[0]
    if pad:
        flat = jnp.pad(flat, (0, pad))     # tiny array; negligible
    return flat.reshape(lat_rows, LANE)


def _make_kernel(*, rows, tile_rows, tiles_per_core, chunk, include_kl):
    """Build the reduction kernel with all tiling parameters baked in as statics."""
    n_chunks = tile_rows // chunk

    def kernel(*refs):
        if include_kl:
            x_in_ref, x_out_ref, mu_ref, logvar_ref, out_ref = refs
        else:
            x_in_ref, x_out_ref, out_ref = refs

        c = pl.program_id(0)                     # partial / core index
        i = pl.program_id(1)                     # streaming tile index
        t = c * tiles_per_core + i               # logical (unclamped) tile index
        row0 = t * tile_rows                     # first global row of this tile

        @pl.when(i == 0)
        def _():
            out_ref[...] = jnp.zeros_like(out_ref)

        def tile_partial(masked):
            base = (jax.lax.broadcasted_iota(jnp.int32, (chunk, 1), 0)
                    if masked else None)

            def body(k, acc):
                off = pl.multiple_of(k * chunk, chunk)
                a = x_in_ref[pl.ds(off, chunk), :].astype(jnp.float32)
                b = x_out_ref[pl.ds(off, chunk), :].astype(jnp.float32)
                d = b - a
                sq = d * d
                if masked:
                    sq = jnp.where(row0 + off + base < rows, sq, 0.0)
                return acc + jnp.sum(
                    sq.reshape(chunk // SUBLANE, SUBLANE, LANE), axis=0)

            return jax.lax.fori_loop(
                0, n_chunks, body,
                jnp.zeros((SUBLANE, LANE), jnp.float32),
                unroll=n_chunks <= 8)

        full_tile = row0 + tile_rows <= rows

        @pl.when(full_tile)
        def _():
            out_ref[...] += tile_partial(False)

        @pl.when(jnp.logical_not(full_tile))
        def _():
            out_ref[...] += tile_partial(True)

        if include_kl:
            # KL: -0.5 * sum(1 + logvar - mu^2 - exp(logvar)); added exactly once.
            # Zero padding of the latent slab is exact: 1 + 0 - 0 - exp(0) = 0.
            @pl.when(jnp.logical_and(c == 0, i == tiles_per_core - 1))
            def _():
                lv = logvar_ref[...]
                m = mu_ref[...]
                kl = -0.5 * (1.0 + lv - m * m - jnp.exp(lv))
                out_ref[...] += jnp.sum(kl.reshape(-1, SUBLANE, LANE), axis=0)

    return kernel


def _vae_loss_impl(x_in, x_out, mu, logvar, *, max_tile_rows, num_partials,
                   core_parallel):
    assert x_in.shape == x_out.shape, "x_in / x_out shape mismatch"
    assert mu.shape == logvar.shape, "mu / logvar shape mismatch"
    num_partials = max(1, int(num_partials))

    n = int(x_in.size)
    n_lat = int(mu.size)

    flat_in = jnp.ravel(x_in)
    flat_out = jnp.ravel(x_out)

    # Kernel body covers a whole number of (8,128) row groups; the <1024-element
    # flat remainder is summed in plain JAX.  No jnp.pad of the big tensors ever.
    rows = (n // (LANE * SUBLANE)) * SUBLANE
    n_body = rows * LANE
    tail = jnp.float32(0.0)
    if n_body < n:
        ti = flat_in[n_body:].astype(jnp.float32)
        to = flat_out[n_body:].astype(jnp.float32)
        tail = jnp.sum((to - ti) ** 2)
        if n_body:
            flat_in = flat_in[:n_body]
            flat_out = flat_out[:n_body]

    # KL: in-kernel for small latents, otherwise trivial wrapper-side jnp.
    kl_in_kernel = (rows > 0) and (0 < n_lat <= 32768)
    kl_host = jnp.float32(0.0)
    if not kl_in_kernel:
        # TODO(synk): stream very large mu/logvar along the reduction axis instead.
        mu32 = jnp.ravel(mu).astype(jnp.float32)
        lv32 = jnp.ravel(logvar).astype(jnp.float32)
        kl_host = -0.5 * jnp.sum(1.0 + lv32 - mu32 * mu32 - jnp.exp(lv32))

    if rows == 0:
        return tail + kl_host

    # Tiling: one big tile if everything fits, else max-size tiles + masked tail.
    cap = _round_up(max(int(max_tile_rows), 128), 128)
    tile_rows = rows if rows <= cap else cap
    chunk = _pick_chunk(tile_rows)
    total_tiles = _cdiv(rows, tile_rows)
    tiles_per_core = _cdiv(total_tiles, num_partials)

    kernel = _make_kernel(rows=rows, tile_rows=tile_rows,
                          tiles_per_core=tiles_per_core, chunk=chunk,
                          include_kl=kl_in_kernel)

    def x_map(c, i):
        # Clamp duplicated (fully out-of-range) tiles; the kernel masks them out.
        return (jnp.minimum(c * tiles_per_core + i, total_tiles - 1), 0)

    in_specs = [pl.BlockSpec((tile_rows, LANE), x_map),
                pl.BlockSpec((tile_rows, LANE), x_map)]
    args = [flat_in.reshape(rows, LANE), flat_out.reshape(rows, LANE)]

    lat_rows = 0
    if kl_in_kernel:
        lat_rows = _round_up(max(_cdiv(n_lat, LANE), 1), SUBLANE)
        in_specs += [pl.BlockSpec((lat_rows, LANE), lambda c, i: (0, 0)),
                     pl.BlockSpec((lat_rows, LANE), lambda c, i: (0, 0))]
        args += [_latent_slab(mu, lat_rows), _latent_slab(logvar, lat_rows)]

    isz_in = jnp.dtype(x_in.dtype).itemsize
    isz_out = jnp.dtype(x_out.dtype).itemsize

    # Only set an explicit VMEM limit if the double-buffered footprint is large.
    est = 2 * tile_rows * LANE * (isz_in + isz_out)          # 2 bufs per input
    est += 2 * 2 * lat_rows * LANE * 4 + 2 * num_partials * SUBLANE * LANE * 4
    vmem_limit = min(est + (4 << 20), 32 << 20) if est > (12 << 20) else None

    if core_parallel and num_partials > 1:
        dims = (pltpu.CORE_PARALLEL, pltpu.ARBITRARY)
    else:
        dims = ("parallel", "arbitrary")

    cost = pl.CostEstimate(
        flops=3 * n + 6 * n_lat,
        transcendentals=n_lat if kl_in_kernel else 0,
        bytes_accessed=n_body * (isz_in + isz_out) + 8 * n_lat
                       + num_partials * SUBLANE * LANE * 4)

    partials = pl.pallas_call(
        kernel,
        out_shape=jax.ShapeDtypeStruct((num_partials * SUBLANE, LANE), jnp.float32),
        grid_spec=pltpu.PrefetchScalarGridSpec(
            num_scalar_prefetch=0,
            grid=(num_partials, tiles_per_core),
            in_specs=in_specs,
            out_specs=pl.BlockSpec((SUBLANE, LANE), lambda c, i: (c, 0)),
        ),
        compiler_params=pltpu.CompilerParams(
            dimension_semantics=dims, vmem_limit_bytes=vmem_limit),
        cost_estimate=cost,
    )(*args)

    # Per-core (8,128) partial vregs -> scalar (tiny, plain JAX).
    return jnp.sum(partials) + tail + kl_host


def vae_loss(x_in, x_out, mu, logvar, *, max_tile_rows=4096,
             num_partials=None, core_parallel=None):
    """Pallas implementation of VAELoss(reduction='sum').forward."""
    if num_partials is None or core_parallel is None:
        d_np, d_cp = _default_partitioning()
        if num_partials is None:
            num_partials = d_np
        if core_parallel is None:
            core_parallel = d_cp and num_partials > 1
    try:
        return _vae_loss_impl(x_in, x_out, mu, logvar,
                              max_tile_rows=max_tile_rows,
                              num_partials=num_partials,
                              core_parallel=core_parallel)
    except Exception:
        # Safe fallback: single partial, plain dimension semantics.
        if num_partials != 1 or core_parallel:
            return _vae_loss_impl(x_in, x_out, mu, logvar,
                                  max_tile_rows=max_tile_rows,
                                  num_partials=1, core_parallel=False)
        raise


def vae_loss_ref(x_in, x_out, mu, logvar):
    recon = jnp.sum((x_out.astype(jnp.float32) - x_in.astype(jnp.float32)) ** 2)
    mu32 = mu.astype(jnp.float32)
    lv32 = logvar.astype(jnp.float32)
    kl = -0.5 * jnp.sum(1.0 + lv32 - mu32 ** 2 - jnp.exp(lv32))
    return recon + kl


if __name__ == "__main__":
    key = jax.random.PRNGKey(0)
    k1, k2, k3, k4 = jax.random.split(key, 4)

    # Small shapes consistent with a conv VAE: images NCHW (2, 4, 16, 16),
    # latent stats (2, 32).
    x_in = jax.random.normal(k1, (2, 4, 16, 16), dtype=jnp.float32)
    x_out = jax.random.normal(k2, (2, 4, 16, 16), dtype=jnp.float32)
    mu = jax.random.normal(k3, (2, 32), dtype=jnp.float32)
    logvar = 0.1 * jax.random.normal(k4, (2, 32), dtype=jnp.float32)

    loss = vae_loss(x_in, x_out, mu, logvar)
    jax.block_until_ready(loss)
    ref = vae_loss_ref(x_in, x_out, mu, logvar)
    assert jnp.allclose(loss, ref, rtol=1e-5, atol=1e-3), (loss, ref)

    # Native-dtype streaming path: bf16 reconstruction tensors, cast in-kernel.
    x_in_b = x_in.astype(jnp.bfloat16)
    x_out_b = x_out.astype(jnp.bfloat16)
    loss_b = vae_loss(x_in_b, x_out_b, mu, logvar)
    jax.block_until_ready(loss_b)
    ref_b = vae_loss_ref(x_in_b, x_out_b, mu, logvar)
    assert jnp.allclose(loss_b, ref_b, rtol=2e-2, atol=1e-1), (loss_b, ref_b)

    # Awkward size: exercises the masked partial tile, the clamped duplicate tile
    # (num_partials=2 forced) and the plain-JAX flat tail path.
    k5, k6 = jax.random.split(k4)
    y_in = jax.random.normal(k5, (5, 7, 64, 9), dtype=jnp.float32)
    y_out = jax.random.normal(k6, (5, 7, 64, 9), dtype=jnp.float32)
    loss_o = vae_loss(y_in, y_out, mu, logvar, max_tile_rows=128,
                      num_partials=2, core_parallel=False)
    jax.block_until_ready(loss_o)
    ref_o = vae_loss_ref(y_in, y_out, mu, logvar)
    assert jnp.allclose(loss_o, ref_o, rtol=1e-4, atol=1e-2), (loss_o, ref_o)

    print("KERNEL_OK")
</pallas_src>

<mosaic_0001>
module attributes {stable_mosaic.version = 11 : i64} {
  func.func @kernel(%arg0: i32, %arg1: i32, %arg2: memref<16x128xf32, #tpu.memory_space<vmem>>, %arg3: memref<16x128xf32, #tpu.memory_space<vmem>>, %arg4: memref<8x128xf32, #tpu.memory_space<vmem>>, %arg5: memref<8x128xf32, #tpu.memory_space<vmem>>, %arg6: memref<8x128xf32, #tpu.memory_space<vmem>>) attributes {dimension_semantics = [#tpu.dimension_semantics<parallel>, #tpu.dimension_semantics<arbitrary>], iteration_bounds = array<i64: 1, 1>, scalar_prefetch = 0 : i64, scratch_operands = 0 : i64, tpu.core_type = #tpu.core_type<tc>, window_params = [{transform_indices = @transform_0, window_bounds = array<i64: 16, 128>}, {transform_indices = @transform_1, window_bounds = array<i64: 16, 128>}, {pipeline_mode = #tpu.pipeline_mode<synchronous>, transform_indices = @transform_2, window_bounds = array<i64: 8, 128>}, {pipeline_mode = #tpu.pipeline_mode<synchronous>, transform_indices = @transform_3, window_bounds = array<i64: 8, 128>}, {transform_indices = @transform_4, window_bounds = array<i64: 8, 128>}]} {
    %c1_i32 = arith.constant 1 : i32
    %0 = arith.muli %arg0, %c1_i32 : i32
    %1 = arith.addi %0, %arg1 : i32
    %c16_i32 = arith.constant 16 : i32
    %2 = arith.muli %1, %c16_i32 : i32
    %c0_i32 = arith.constant 0 : i32
    %3 = arith.cmpi eq, %arg1, %c0_i32 : i32
    %4 = arith.extui %3 : i1 to i32
    %c0_i32_0 = arith.constant 0 : i32
    %5 = arith.cmpi ne, %4, %c0_i32_0 : i32
    scf.if %5 {
      %cst = arith.constant 0.000000e+00 : f32
      %18 = vector.broadcast %cst : f32 to vector<8x128xf32>
      %c0 = arith.constant 0 : index
      %c0_8 = arith.constant 0 : index
      %19 = vector.load %arg6[%c0, %c0_8] : memref<8x128xf32, #tpu.memory_space<vmem>>, vector<8x128xf32>
      tpu.vector_store %arg6[%c0, %c0_8], %18 {strides = array<i32>} : memref<8x128xf32, #tpu.memory_space<vmem>>, vector<8x128xf32>,
    } else {
    }
    %c16_i32_1 = arith.constant 16 : i32
    %6 = arith.addi %2, %c16_i32_1 : i32
    %c16_i32_2 = arith.constant 16 : i32
    %7 = arith.cmpi sle, %6, %c16_i32_2 : i32
    %8 = arith.extui %7 : i1 to i32
    %c0_i32_3 = arith.constant 0 : i32
    %9 = arith.cmpi ne, %8, %c0_i32_3 : i32
    scf.if %9 {
      %c0 = arith.constant 0 : index
      %c0_8 = arith.constant 0 : index
      %18 = vector.load %arg6[%c0, %c0_8] : memref<8x128xf32, #tpu.memory_space<vmem>>, vector<8x128xf32>
      %cst = arith.constant 0.000000e+00 : f32
      %19 = vector.broadcast %cst : f32 to vector<8x128xf32>
      %c0_i32_9 = arith.constant 0 : i32
      %c16_i32_10 = arith.constant 16 : i32
      %20 = arith.muli %c0_i32_9, %c16_i32_10 : i32
      %21 = tpu.assume_multiple %20, 16 : i32
      %22 = arith.index_cast %21 : i32 to index
      %c0_11 = arith.constant 0 : index
      %23 = vector.load %arg2[%22, %c0_11] : memref<16x128xf32, #tpu.memory_space<vmem>>, vector<16x128xf32>
      %24 = arith.index_cast %21 : i32 to index
      %c0_12 = arith.constant 0 : index
      %25 = vector.load %arg3[%24, %c0_12] : memref<16x128xf32, #tpu.memory_space<vmem>>, vector<16x128xf32>
      %26 = arith.subf %25, %23 : vector<16x128xf32>
      %27 = arith.mulf %26, %26 : vector<16x128xf32>
      %28 = vector.shape_cast %27 : vector<16x128xf32> to vector<2x8x128xf32>
      %cst_13 = arith.constant dense<0.000000e+00> : vector<8x128xf32>
      %29 = vector.multi_reduction <add>, %28, %cst_13 [0] : vector<2x8x128xf32> to vector<8x128xf32>
      %30 = arith.addf %19, %29 : vector<8x128xf32>
      %c1_i32_14 = arith.constant 1 : i32
      %31 = arith.addf %18, %30 : vector<8x128xf32>
      %c0_15 = arith.constant 0 : index
      %c0_16 = arith.constant 0 : index
      %32 = vector.load %arg6[%c0_15, %c0_16] : memref<8x128xf32, #tpu.memory_space<vmem>>, vector<8x128xf32>
      tpu.vector_store %arg6[%c0_15, %c0_16], %31 {strides = array<i32>} : memref<8x128xf32, #tpu.memory_space<vmem>>, vector<8x128xf32>,
    } else {
    }
    %true = arith.constant true
    %10 = arith.xori %7, %true : i1
    %11 = arith.extui %10 : i1 to i32
    %c0_i32_4 = arith.constant 0 : i32
    %12 = arith.cmpi ne, %11, %c0_i32_4 : i32
    scf.if %12 {
      %c0 = arith.constant 0 : index
      %c0_8 = arith.constant 0 : index
      %18 = vector.load %arg6[%c0, %c0_8] : memref<8x128xf32, #tpu.memory_space<vmem>>, vector<8x128xf32>
      %19 = tpu.iota {dimensions = array<i32: 0>} : vector<16x1xi32>
      %cst = arith.constant 0.000000e+00 : f32
      %20 = vector.broadcast %cst : f32 to vector<8x128xf32>
      %c0_i32_9 = arith.constant 0 : i32
      %c16_i32_10 = arith.constant 16 : i32
      %21 = arith.muli %c0_i32_9, %c16_i32_10 : i32
      %22 = tpu.assume_multiple %21, 16 : i32
      %23 = arith.index_cast %22 : i32 to index
      %c0_11 = arith.constant 0 : index
      %24 = vector.load %arg2[%23, %c0_11] : memref<16x128xf32, #tpu.memory_space<vmem>>, vector<16x128xf32>
      %25 = arith.index_cast %22 : i32 to index
      %c0_12 = arith.constant 0 : index
      %26 = vector.load %arg3[%25, %c0_12] : memref<16x128xf32, #tpu.memory_space<vmem>>, vector<16x128xf32>
      %27 = arith.subf %26, %24 : vector<16x128xf32>
      %28 = arith.mulf %27, %27 : vector<16x128xf32>
      %29 = arith.addi %2, %22 : i32
      %30 = vector.broadcast %29 : i32 to vector<16x1xi32>
      %31 = arith.addi %30, %19 : vector<16x1xi32>
      %c16_i32_13 = arith.constant 16 : i32
      %32 = vector.broadcast %c16_i32_13 : i32 to vector<16x1xi32>
      %33 = arith.cmpi slt, %31, %32 : vector<16x1xi32>
      %cst_14 = arith.constant 0.000000e+00 : f32
      %34 = vector.shape_cast %33 : vector<16x1xi1> to vector<16x1xi1>
      %35 = vector.broadcast %34 : vector<16x1xi1> to vector<16x128xi1>
      %36 = vector.broadcast %cst_14 : f32 to vector<16x128xf32>
      %37 = arith.select %35, %28, %36 : vector<16x128xi1>, vector<16x128xf32>
      %38 = vector.shape_cast %37 : vector<16x128xf32> to vector<2x8x128xf32>
      %cst_15 = arith.constant dense<0.000000e+00> : vector<8x128xf32>
      %39 = vector.multi_reduction <add>, %38, %cst_15 [0] : vector<2x8x128xf32> to vector<8x128xf32>
      %40 = arith.addf %20, %39 : vector<8x128xf32>
      %c1_i32_16 = arith.constant 1 : i32
      %41 = arith.addf %18, %40 : vector<8x128xf32>
      %c0_17 = arith.constant 0 : index
      %c0_18 = arith.constant 0 : index
      %42 = vector.load %arg6[%c0_17, %c0_18] : memref<8x128xf32, #tpu.memory_space<vmem>>, vector<8x128xf32>
      tpu.vector_store %arg6[%c0_17, %c0_18], %41 {strides = array<i32>} : memref<8x128xf32, #tpu.memory_space<vmem>>, vector<8x128xf32>,
    } else {
    }
    %c0_i32_5 = arith.constant 0 : i32
    %13 = arith.cmpi eq, %arg0, %c0_i32_5 : i32
    %c0_i32_6 = arith.constant 0 : i32
    %14 = arith.cmpi eq, %arg1, %c0_i32_6 : i32
    %15 = arith.andi %13, %14 : i1
    %16 = arith.extui %15 : i1 to i32
    %c0_i32_7 = arith.constant 0 : i32
    %17 = arith.cmpi ne, %16, %c0_i32_7 : i32
    scf.if %17 {
      %c0 = arith.constant 0 : index
      %c0_8 = arith.constant 0 : index
      %18 = vector.load %arg5[%c0, %c0_8] : memref<8x128xf32, #tpu.memory_space<vmem>>, vector<8x128xf32>
      %c0_9 = arith.constant 0 : index
      %c0_10 = arith.constant 0 : index
      %19 = vector.load %arg4[%c0_9, %c0_10] : memref<8x128xf32, #tpu.memory_space<vmem>>, vector<8x128xf32>
      %cst = arith.constant 1.000000e+00 : f32
      %20 = vector.broadcast %cst : f32 to vector<8x128xf32>
      %21 = arith.addf %20, %18 : vector<8x128xf32>
      %22 = arith.mulf %19, %19 : vector<8x128xf32>
      %23 = arith.subf %21, %22 : vector<8x128xf32>
      %24 = math.exp %18 : vector<8x128xf32>
      %25 = arith.subf %23, %24 : vector<8x128xf32>
      %cst_11 = arith.constant -5.000000e-01 : f32
      %26 = vector.broadcast %cst_11 : f32 to vector<8x128xf32>
      %27 = arith.mulf %26, %25 : vector<8x128xf32>
      %c0_12 = arith.constant 0 : index
      %c0_13 = arith.constant 0 : index
      %28 = vector.load %arg6[%c0_12, %c0_13] : memref<8x128xf32, #tpu.memory_space<vmem>>, vector<8x128xf32>
      %29 = vector.shape_cast %27 : vector<8x128xf32> to vector<1x8x128xf32>
      %cst_14 = arith.constant dense<0.000000e+00> : vector<8x128xf32>
      %30 = vector.multi_reduction <add>, %29, %cst_14 [0] : vector<1x8x128xf32> to vector<8x128xf32>
      %31 = arith.addf %28, %30 : vector<8x128xf32>
      %c0_15 = arith.constant 0 : index
      %c0_16 = arith.constant 0 : index
      %32 = vector.load %arg6[%c0_15, %c0_16] : memref<8x128xf32, #tpu.memory_space<vmem>>, vector<8x128xf32>
      tpu.vector_store %arg6[%c0_15, %c0_16], %31 {strides = array<i32>} : memref<8x128xf32, #tpu.memory_space<vmem>>, vector<8x128xf32>,
    } else {
    }
    return
  }
  func.func @transform_0(%arg0: i32, %arg1: i32) -> (i32, i32) {
    %c1_i32 = arith.constant 1 : i32
    %0 = arith.muli %arg0, %c1_i32 : i32
    %1 = arith.addi %0, %arg1 : i32
    %c0_i32 = arith.constant 0 : i32
    %2 = arith.minsi %1, %c0_i32 : i32
    %c0_i32_0 = arith.constant 0 : i32
    %c0_i32_1 = arith.constant 0 : i32
    return %2, %c0_i32_0 : i32, i32
  }
  func.func @transform_1(%arg0: i32, %arg1: i32) -> (i32, i32) {
    %c1_i32 = arith.constant 1 : i32
    %0 = arith.muli %arg0, %c1_i32 : i32
    %1 = arith.addi %0, %arg1 : i32
    %c0_i32 = arith.constant 0 : i32
    %2 = arith.minsi %1, %c0_i32 : i32
    %c0_i32_0 = arith.constant 0 : i32
    %c0_i32_1 = arith.constant 0 : i32
    return %2, %c0_i32_0 : i32, i32
  }
  func.func @transform_2(%arg0: i32, %arg1: i32) -> (i32, i32) {
    %c0_i32 = arith.constant 0 : i32
    %c0_i32_0 = arith.constant 0 : i32
    %c0_i32_1 = arith.constant 0 : i32
    return %c0_i32, %c0_i32_0 : i32, i32
  }
  func.func @transform_3(%arg0: i32, %arg1: i32) -> (i32, i32) {
    %c0_i32 = arith.constant 0 : i32
    %c0_i32_0 = arith.constant 0 : i32
    %c0_i32_1 = arith.constant 0 : i32
    return %c0_i32, %c0_i32_0 : i32, i32
  }
  func.func @transform_4(%arg0: i32, %arg1: i32) -> (i32, i32) {
    %c0_i32 = arith.constant 0 : i32
    %c0_i32_0 = arith.constant 0 : i32
    return %arg0, %c0_i32 : i32, i32
  }
}

</mosaic_0001>

<bundles_post_ra>
// kernel: tpu_custom_call.1
= control target key start
LH: loop header
LB: loop body
LE: loop exit
PB: predicated region body
PF: predicated region fallthrough
CT: control target
= control target key end

     0   :  { %9 = vsyncpa [#allocation3], 0  ;;  %s364_s0 = inlined_call_operand.hbm [shape: f32[16,128], index: 0, kind: input, shape index: {}]   ;;  %s365_s1 = inlined_call_operand.hbm [shape: f32[16,128], index: 1, kind: input, shape index: {}]   ;;  %s366_s2 = inlined_call_operand.hbm [shape: f32[8,128], index: 2, kind: input, shape index: {}]   ;;  %s367_s3 = inlined_call_operand.vmem [shape: f32[8,128], index: 3, kind: input, shape index: {}]   ;;  %s368_s4 = inlined_call_operand.hbm [shape: f32[8,128], index: 4, kind: output, shape index: {}]  }
   0x1   :  { %10 = vsyncpa [#allocation6], 0 }
   0x2   :  { %11 = vsyncpa [#allocation4], 0  ;;  %s275_s15 = smov [#allocation5]   ;;  %s276_s17 = smov [#allocation2]  }
   0x3   :  { %s41_s16 = sshll.u32 %s275_s15, 4  ;;  %s23_s18 = sshll.u32 %s276_s17, 4  ;;  %s42_s16 = int_to_ptr.vmem [resolvable:$true] %s41_s16  ;;  %s306_s18 = int_to_ptr.vmem [resolvable:$true] %s23_s18 }
   0x4   :  { %s181_s21 = scalar_lea.hbm %s365_s1, 256 }
   0x5   :  { %p182_p0 = scmp.ne.s32.totalorder %s365_s1, %s181_s21  ;;  %p185_p1 = scmp.lt.u32.totalorder %s181_s21, %s365_s1 }
   0x7   :  { %p187_p2 = pnand %p185_p1, %p182_p0 }
   0x9   :  { %190 = shalt.err (!%p187_p2)
}
   0xa   :  { %s191_s26 = scalar_lea.vmem %s42_s16, 256  ;;  %p196_p4 = scmp.lt.s32.totalorder %s42_s16, %s42_s16 }
   0xb   :  { %p192_p3 = scmp.ne.s32.totalorder %s42_s16, %s191_s26  ;;  %p197_p5 = scmp.lt.s32.totalorder %s191_s26, %s191_s26 }
   0xd   :  { %p198_p6 = por %p197_p5, %p196_p4 }
   0xf   :  { %p199_p7 = pnand %p198_p6, %p192_p3 }
  0x11   :  { %202 = shalt.err (!%p199_p7)
}
  0x12   :  { %s277_s27 = smov 128   ;;  %s278_s28 = smov 8  }
  0x13   :  { %47 = dma.hbm_to_vmem [thread:$0]  %s365_s1, 256, %s42_s16, [#allocation6], %s277_s27, %s277_s27, %s278_s28  }
  0x14   :  { %s203_s7 = scalar_lea.hbm %s364_s0, 256 }
  0x15   :  { %p204_p8 = scmp.ne.s32.totalorder %s364_s0, %s203_s7  ;;  %p207_p9 = scmp.lt.u32.totalorder %s203_s7, %s364_s0 }
  0x17   :  { %p209_p10 = pnand %p207_p9, %p204_p8 }
  0x19   :  { %212 = shalt.err (!%p209_p10)
}
  0x1a   :  { %s213_s12 = scalar_lea.vmem %s306_s18, 256  ;;  %p218_p12 = scmp.lt.s32.totalorder %s306_s18, %s306_s18 }
  0x1b   :  { %p214_p11 = scmp.ne.s32.totalorder %s306_s18, %s213_s12  ;;  %p219_p13 = scmp.lt.s32.totalorder %s213_s12, %s213_s12 }
  0x1d   :  { %p220_p0 = por %p219_p13, %p218_p12 }
  0x1f   :  { %p221_p1 = pnand %p220_p0, %p214_p11 }
  0x21   :  { %224 = shalt.err (!%p221_p1)
}
  0x22   :  { %29 = dma.hbm_to_vmem [thread:$0]  %s364_s0, 256, %s306_s18, [#allocation3], %s277_s27, %s277_s27, %s278_s28  }
  0x23   :  { %s279_s14 = smov [#allocation7]   ;;  %s225_s19 = scalar_lea.hbm %s366_s2, 128 }
  0x24   :  { %s54_s15 = sshll.u32 %s279_s14, 4  ;;  %p226_p2 = scmp.ne.s32.totalorder %s366_s2, %s225_s19  ;;  %s55_s15 = int_to_ptr.vmem [resolvable:$true] %s54_s15 }
  0x25   :  { %p229_p3 = scmp.lt.u32.totalorder %s225_s19, %s366_s2 }
  0x27   :  { %p231_p4 = pnand %p229_p3, %p226_p2 }
  0x29   :  { %234 = shalt.err (!%p231_p4)
}
  0x2a   :  { %s235_s24 = scalar_lea.vmem %s55_s15, 128  ;;  %p240_p6 = scmp.lt.s32.totalorder %s55_s15, %s55_s15 }
  0x2b   :  { %p236_p5 = scmp.ne.s32.totalorder %s55_s15, %s235_s24  ;;  %p241_p7 = scmp.lt.s32.totalorder %s235_s24, %s235_s24 }
  0x2d   :  { %p242_p8 = por %p241_p7, %p240_p6 }
  0x2f   :  { %p243_p9 = pnand %p242_p8, %p236_p5 }
  0x31   :  { %246 = shalt.err (!%p243_p9)
}
  0x32   :  { %57 = dma.hbm_to_vmem [thread:$0]  %s366_s2, 128, %s55_s15, [#allocation6]  }
  0x33   :  { %269 = dma.done.wait [#allocation3], 256  }
  0x34   :  { %270 = vsyncadd [#allocation3], 4294967040 }
  0x35   :  { %271 = dma.done.wait [#allocation6], 384  }
  0x36   :  { %272 = vsyncadd [#allocation6], 4294966912  ;;  %v90_v0 = vld [vmem:[#allocation2] sm:$0xff]  ;;  %v91_v1 = vld [vmem:[#allocation2 + $0x8] sm:$0xff]  ;;  %s280_s2 = smov [#allocation8]  }
  0x37   :  { %v92_v2 = vld [vmem:[#allocation5] sm:$0xff]  ;;  %v93_v3 = vld [vmem:[#allocation5 + $0x8] sm:$0xff]  ;;  %v139_v4 = vld [vmem:[%s367_s3] sm:$0xff]  ;;  %s158_s27 = sshll.u32 %s280_s2, 4  ;;  %s159_s27 = int_to_ptr.vmem [resolvable:$true] %s158_s27 }
  0x38   :  { %v144_v5 = vmul.f32 1.442695, %v139_v4  ;;  %v94_v6 = vsub.f32 %v92_v2, %v90_v0  ;;  %v95_v7 = vsub.f32 %v93_v3, %v91_v1  ;;  %v140_v8 = vld [vmem:[#allocation7] sm:$0xff]  ;;  %v141_v11 = vadd.f32 1.0, %v139_v4  ;;  %s247_s3 = scalar_lea.vmem %s159_s27, 128  ;;  %p252_p11 = scmp.lt.s32.totalorder %s159_s27, %s159_s27 }
  0x39   :  { %v142_v12 = vmul.f32 %v140_v8, %v140_v8  ;;  %p248_p10 = scmp.ne.s32.totalorder %s159_s27, %s247_s3  ;;  %p253_p12 = scmp.lt.s32.totalorder %s247_s3, %s247_s3 }
  0x3a   :  { %179 = vpow2.f32 %v144_v5  ;;  %v96_v9 = vmul.f32 %v94_v6, %v94_v6  ;;  %v97_v10 = vmul.f32 %v95_v7, %v95_v7 }
  0x3b   :  { %v143_v14 = vsub.f32 %v141_v11, %v142_v12  ;;  %p254_p13 = por %p253_p12, %p252_p11 }
  0x3c   :  { %v98_v13 = vadd.f32 %v97_v10, %v96_v9 }
  0x3d   :  { %p255_p0 = pnand %p254_p13, %p248_p10 }
  0x44   :  { %v180_v15 = vpop.eup %179 }
  0x45   :  { %v146_v16 = vsub.f32 %v143_v14, %v180_v15 }
  0x47   :  { %v147_v17 = vmul.f32 -0.5, %v146_v16 }
  0x49   :  { %v150_v18 = vadd.f32 %v147_v17, %v98_v13 }
  0x4b   :  { %151 = vst [vmem:[#allocation8] sm:$0xff] %v150_v18 }
  0x4c   :  { %258 = shalt.err (!%p255_p0)
}
  0x4d   :  { %s259_s30 = scalar_lea.hbm %s368_s4, 128 }
  0x4e   :  { %p260_p1 = scmp.ne.s32.totalorder %s368_s4, %s259_s30  ;;  %p263_p2 = scmp.lt.u32.totalorder %s259_s30, %s368_s4 }
  0x50   :  { %p265_p3 = pnand %p263_p2, %p260_p1 }
  0x52   :  { %268 = shalt.err (!%p265_p3)
}
  0x53   :  { %161 = dma.vmem_to_hbm [thread:$0]  %s159_s27, 128, %s368_s4, [#allocation4]  }
  0x54   :  { %273 = dma.done.wait [#allocation4], 128  }
  0x55   :  { %274 = vsyncadd [#allocation4], 4294967168 }
  0x56   :  { %165 = vsyncpa [#allocation3], 1 }
  0x57   :  { %166 = vsyncpa [#allocation6], 1 }
  0x58   :  { %167 = vsyncpa [#allocation4], 1 }

</bundles_post_ra>
